<compile_context>
chip_gen: v5e
topology: v5e:2x2
jax: 0.10.0
libtpu: 0.0.40
codegen_flags: <defaults>
</compile_context>

<pallas_src>
import functools

import jax
import jax.numpy as jnp
from jax.experimental import pallas as pl
from jax.experimental.pallas import tpu as pltpu


def _prediction_head_kernel(x_ref, wh_ref, bh_ref, scale_ref, shift_ref,
                            wo_ref, bo_ref, o_ref, *, num_hidden_layers: int):
    # x_ref:     (TM, H)        token tile
    # wh_ref:    (L, H, H)      hidden Linear weights, already transposed (in, out)
    # bh_ref:    (L, 1, H)      hidden Linear biases
    # scale_ref: (L, 1, H)      BN eval-mode scale  = gamma / sqrt(var + eps)
    # shift_ref: (L, 1, H)      BN eval-mode shift  = beta - mean * scale
    # wo_ref:    (H, P_pad)     output Linear weight (transposed, lane-padded)
    # bo_ref:    (1, P_pad)     output Linear bias  (lane-padded)
    # o_ref:     (TM, P_pad)
    h = x_ref[...].astype(jnp.float32)                                  # (TM, H)
    for l in range(num_hidden_layers):                                  # unrolled (static)
        z = jnp.dot(h, wh_ref[l], preferred_element_type=jnp.float32)   # (TM, H) MXU
        z = z + bh_ref[l]                                               # (1, H) broadcast
        z = z * scale_ref[l] + shift_ref[l]                             # fused BatchNorm (eval)
        h = jnp.maximum(z, 0.0)                                         # ReLU
    out = jnp.dot(h, wo_ref[...], preferred_element_type=jnp.float32)   # (TM, P_pad)
    out = out + bo_ref[...]
    o_ref[...] = out.astype(o_ref.dtype)                                # lane-dense store


def prediction_head(x,
                    hidden_weights,      # (L, H, H)  torch Linear.weight per layer (out, in)
                    hidden_biases,       # (L, H)
                    bn_weight,           # (L, H)  gamma
                    bn_bias,             # (L, H)  beta
                    bn_running_mean,     # (L, H)
                    bn_running_var,      # (L, H)
                    out_weight,          # (P, H)  torch Linear.weight (out, in)
                    out_bias,            # (P,)
                    *,
                    eps: float = 1e-5,
                    tile_rows: int = 512) -> jax.Array:
    """Pallas equivalent of PredictionHead.forward (BatchNorm in eval mode)."""
    *lead, H = x.shape
    L = int(hidden_weights.shape[0])
    P = int(out_weight.shape[0])
    assert L >= 1

    xf = x.astype(jnp.float32).reshape(-1, H)
    n = xf.shape[0]

    # Row tile: large (amortizes ~0.35us/step grid overhead), multiple of 8,
    # clamped so tiny inputs still produce a single valid tile.
    n8 = ((n + 7) // 8) * 8
    tm = min(tile_rows, n8)
    tm = max(8, (tm // 8) * 8)
    n_pad = ((n + tm - 1) // tm) * tm
    if n_pad != n:
        xf = jnp.pad(xf, ((0, n_pad - n), (0, 0)))

    # Fold eval-mode BatchNorm into per-channel scale/shift (done once, in JAX).
    scale = (bn_weight.astype(jnp.float32)
             / jnp.sqrt(bn_running_var.astype(jnp.float32) + eps))        # (L, H)
    shift = bn_bias.astype(jnp.float32) - bn_running_mean.astype(jnp.float32) * scale

    wh = jnp.transpose(hidden_weights.astype(jnp.float32), (0, 2, 1))     # (L, H, H)
    bh = hidden_biases.astype(jnp.float32).reshape(L, 1, H)
    scale = scale.reshape(L, 1, H)
    shift = shift.reshape(L, 1, H)

    # Lane-dense output: pad output_dim up to a multiple of 128.
    p_pad = ((P + 127) // 128) * 128
    wo = jnp.transpose(out_weight.astype(jnp.float32))                    # (H, P)
    wo = jnp.pad(wo, ((0, 0), (0, p_pad - P)))                            # (H, P_pad)
    bo = jnp.pad(out_bias.astype(jnp.float32), (0, p_pad - P)).reshape(1, p_pad)

    grid = (n_pad // tm,)
    kernel = functools.partial(_prediction_head_kernel, num_hidden_layers=L)

    flops = 2 * n_pad * (L * H * H + H * p_pad)
    bytes_accessed = 4 * (n_pad * H + L * H * H + 3 * L * H
                          + H * p_pad + p_pad + n_pad * p_pad)

    out = pl.pallas_call(
        kernel,
        out_shape=jax.ShapeDtypeStruct((n_pad, p_pad), jnp.float32),
        grid=grid,
        in_specs=[
            pl.BlockSpec((tm, H), lambda i: (i, 0)),        # token tile
            pl.BlockSpec((L, H, H), lambda i: (0, 0, 0)),   # weights: VMEM-resident
            pl.BlockSpec((L, 1, H), lambda i: (0, 0, 0)),
            pl.BlockSpec((L, 1, H), lambda i: (0, 0, 0)),
            pl.BlockSpec((L, 1, H), lambda i: (0, 0, 0)),
            pl.BlockSpec((H, p_pad), lambda i: (0, 0)),
            pl.BlockSpec((1, p_pad), lambda i: (0, 0)),
        ],
        out_specs=pl.BlockSpec((tm, p_pad), lambda i: (i, 0)),
        compiler_params=pltpu.CompilerParams(
            dimension_semantics=("parallel",),
        ),
        cost_estimate=pl.CostEstimate(
            flops=flops, transcendentals=0, bytes_accessed=bytes_accessed),
    )(xf, wh, bh, scale, shift, wo, bo)

    out = out[:n, :P]
    return out.reshape(*lead, P)


def _reference(x, hidden_w, hidden_b, bn_w, bn_b, bn_mean, bn_var,
               out_w, out_b, eps=1e-5):
    """Plain-JAX PredictionHead forward (eval-mode BatchNorm), f32 highest precision."""
    h = x.astype(jnp.float32)
    for l in range(hidden_w.shape[0]):
        h = jnp.matmul(h, hidden_w[l].T,
                       precision=jax.lax.Precision.HIGHEST) + hidden_b[l]
        h = (h - bn_mean[l]) / jnp.sqrt(bn_var[l] + eps) * bn_w[l] + bn_b[l]
        h = jnp.maximum(h, 0.0)
    return jnp.matmul(h, out_w.T, precision=jax.lax.Precision.HIGHEST) + out_b


if __name__ == "__main__":
    key = jax.random.PRNGKey(0)
    B, S = 2, 8
    hidden_dim = 256          # the model is the "256d" BERT variant
    num_hidden_layers = 2
    output_dim = 2

    ks = jax.random.split(key, 9)
    x = jax.random.normal(ks[0], (B, S, hidden_dim), dtype=jnp.float32)
    hidden_w = (jax.random.normal(ks[1],
                                  (num_hidden_layers, hidden_dim, hidden_dim),
                                  dtype=jnp.float32)
                / jnp.sqrt(jnp.float32(hidden_dim)))
    hidden_b = 0.1 * jax.random.normal(
        ks[2], (num_hidden_layers, hidden_dim), dtype=jnp.float32)
    bn_weight = 1.0 + 0.1 * jax.random.normal(
        ks[3], (num_hidden_layers, hidden_dim), dtype=jnp.float32)
    bn_bias = 0.1 * jax.random.normal(
        ks[4], (num_hidden_layers, hidden_dim), dtype=jnp.float32)
    bn_mean = 0.1 * jax.random.normal(
        ks[5], (num_hidden_layers, hidden_dim), dtype=jnp.float32)
    bn_var = jax.random.uniform(
        ks[6], (num_hidden_layers, hidden_dim),
        minval=0.5, maxval=1.5, dtype=jnp.float32)
    out_w = (jax.random.normal(ks[7], (output_dim, hidden_dim), dtype=jnp.float32)
             / jnp.sqrt(jnp.float32(hidden_dim)))
    out_b = 0.1 * jax.random.normal(ks[8], (output_dim,), dtype=jnp.float32)

    out = prediction_head(x, hidden_w, hidden_b, bn_weight, bn_bias,
                          bn_mean, bn_var, out_w, out_b)
    out = jax.block_until_ready(out)

    ref = _reference(x, hidden_w, hidden_b, bn_weight, bn_bias,
                     bn_mean, bn_var, out_w, out_b)
    assert out.shape == (B, S, output_dim), out.shape
    err = float(jnp.max(jnp.abs(out - ref)))
    assert err < 1e-3, err

    print("KERNEL_OK")
</pallas_src>

<mosaic_0001>
module attributes {stable_mosaic.version = 11 : i64} {
  func.func @_prediction_head_kernel(%arg0: i32, %arg1: memref<16x256xf32, #tpu.memory_space<vmem>>, %arg2: memref<2x256x256xf32, #tpu.memory_space<vmem>>, %arg3: memref<2x1x256xf32, #tpu.memory_space<vmem>>, %arg4: memref<2x1x256xf32, #tpu.memory_space<vmem>>, %arg5: memref<2x1x256xf32, #tpu.memory_space<vmem>>, %arg6: memref<256x128xf32, #tpu.memory_space<vmem>>, %arg7: memref<1x128xf32, #tpu.memory_space<vmem>>, %arg8: memref<16x128xf32, #tpu.memory_space<vmem>>) attributes {dimension_semantics = [#tpu.dimension_semantics<parallel>], iteration_bounds = array<i64: 1>, scalar_prefetch = 0 : i64, scratch_operands = 0 : i64, tpu.core_type = #tpu.core_type<tc>, window_params = [{transform_indices = @transform_0, window_bounds = array<i64: 16, 256>}, {pipeline_mode = #tpu.pipeline_mode<synchronous>, transform_indices = @transform_1, window_bounds = array<i64: 2, 256, 256>}, {pipeline_mode = #tpu.pipeline_mode<synchronous>, transform_indices = @transform_2, window_bounds = array<i64: 2, 1, 256>}, {pipeline_mode = #tpu.pipeline_mode<synchronous>, transform_indices = @transform_3, window_bounds = array<i64: 2, 1, 256>}, {pipeline_mode = #tpu.pipeline_mode<synchronous>, transform_indices = @transform_4, window_bounds = array<i64: 2, 1, 256>}, {pipeline_mode = #tpu.pipeline_mode<synchronous>, transform_indices = @transform_5, window_bounds = array<i64: 256, 128>}, {pipeline_mode = #tpu.pipeline_mode<synchronous>, transform_indices = @transform_6, window_bounds = array<i64: 1, 128>}, {transform_indices = @transform_7, window_bounds = array<i64: 16, 128>}]} {
    %c0 = arith.constant 0 : index
    %c0_0 = arith.constant 0 : index
    %0 = vector.load %arg1[%c0, %c0_0] : memref<16x256xf32, #tpu.memory_space<vmem>>, vector<16x256xf32>
    %c0_1 = arith.constant 0 : index
    %c0_2 = arith.constant 0 : index
    %c0_3 = arith.constant 0 : index
    %1 = vector.load %arg2[%c0_1, %c0_2, %c0_3] : memref<2x256x256xf32, #tpu.memory_space<vmem>>, vector<1x256x256xf32>
    %2 = vector.shape_cast %1 : vector<1x256x256xf32> to vector<256x256xf32>
    %cst = arith.constant dense<0.000000e+00> : vector<16x256xf32>
    %3 = tpu.matmul %0, %2, %cst {dimension_numbers = #tpu.dot_dimension_numbers<[1], [0], [0], [1], [0, 0, 1, 1], [], []>} : vector<16x256xf32>, vector<256x256xf32>, vector<16x256xf32> -> vector<16x256xf32>
    %c0_4 = arith.constant 0 : index
    %c0_5 = arith.constant 0 : index
    %c0_6 = arith.constant 0 : index
    %4 = vector.load %arg3[%c0_4, %c0_5, %c0_6] : memref<2x1x256xf32, #tpu.memory_space<vmem>>, vector<1x1x256xf32>
    %5 = vector.shape_cast %4 : vector<1x1x256xf32> to vector<1x256xf32>
    %6 = vector.broadcast %5 : vector<1x256xf32> to vector<16x256xf32>
    %7 = arith.addf %3, %6 : vector<16x256xf32>
    %c0_7 = arith.constant 0 : index
    %c0_8 = arith.constant 0 : index
    %c0_9 = arith.constant 0 : index
    %8 = vector.load %arg4[%c0_7, %c0_8, %c0_9] : memref<2x1x256xf32, #tpu.memory_space<vmem>>, vector<1x1x256xf32>
    %9 = vector.shape_cast %8 : vector<1x1x256xf32> to vector<1x256xf32>
    %10 = vector.broadcast %9 : vector<1x256xf32> to vector<16x256xf32>
    %11 = arith.mulf %7, %10 : vector<16x256xf32>
    %c0_10 = arith.constant 0 : index
    %c0_11 = arith.constant 0 : index
    %c0_12 = arith.constant 0 : index
    %12 = vector.load %arg5[%c0_10, %c0_11, %c0_12] : memref<2x1x256xf32, #tpu.memory_space<vmem>>, vector<1x1x256xf32>
    %13 = vector.shape_cast %12 : vector<1x1x256xf32> to vector<1x256xf32>
    %14 = vector.broadcast %13 : vector<1x256xf32> to vector<16x256xf32>
    %15 = arith.addf %11, %14 : vector<16x256xf32>
    %cst_13 = arith.constant 0.000000e+00 : f32
    %16 = vector.broadcast %cst_13 : f32 to vector<16x256xf32>
    %17 = arith.maximumf %15, %16 : vector<16x256xf32>
    %c1 = arith.constant 1 : index
    %c0_14 = arith.constant 0 : index
    %c0_15 = arith.constant 0 : index
    %18 = vector.load %arg2[%c1, %c0_14, %c0_15] : memref<2x256x256xf32, #tpu.memory_space<vmem>>, vector<1x256x256xf32>
    %19 = vector.shape_cast %18 : vector<1x256x256xf32> to vector<256x256xf32>
    %cst_16 = arith.constant dense<0.000000e+00> : vector<16x256xf32>
    %20 = tpu.matmul %17, %19, %cst_16 {dimension_numbers = #tpu.dot_dimension_numbers<[1], [0], [0], [1], [0, 0, 1, 1], [], []>} : vector<16x256xf32>, vector<256x256xf32>, vector<16x256xf32> -> vector<16x256xf32>
    %c1_17 = arith.constant 1 : index
    %c0_18 = arith.constant 0 : index
    %c0_19 = arith.constant 0 : index
    %21 = vector.load %arg3[%c1_17, %c0_18, %c0_19] : memref<2x1x256xf32, #tpu.memory_space<vmem>>, vector<1x1x256xf32>
    %22 = vector.shape_cast %21 : vector<1x1x256xf32> to vector<1x256xf32>
    %23 = vector.broadcast %22 : vector<1x256xf32> to vector<16x256xf32>
    %24 = arith.addf %20, %23 : vector<16x256xf32>
    %c1_20 = arith.constant 1 : index
    %c0_21 = arith.constant 0 : index
    %c0_22 = arith.constant 0 : index
    %25 = vector.load %arg4[%c1_20, %c0_21, %c0_22] : memref<2x1x256xf32, #tpu.memory_space<vmem>>, vector<1x1x256xf32>
    %26 = vector.shape_cast %25 : vector<1x1x256xf32> to vector<1x256xf32>
    %27 = vector.broadcast %26 : vector<1x256xf32> to vector<16x256xf32>
    %28 = arith.mulf %24, %27 : vector<16x256xf32>
    %c1_23 = arith.constant 1 : index
    %c0_24 = arith.constant 0 : index
    %c0_25 = arith.constant 0 : index
    %29 = vector.load %arg5[%c1_23, %c0_24, %c0_25] : memref<2x1x256xf32, #tpu.memory_space<vmem>>, vector<1x1x256xf32>
    %30 = vector.shape_cast %29 : vector<1x1x256xf32> to vector<1x256xf32>
    %31 = vector.broadcast %30 : vector<1x256xf32> to vector<16x256xf32>
    %32 = arith.addf %28, %31 : vector<16x256xf32>
    %cst_26 = arith.constant 0.000000e+00 : f32
    %33 = vector.broadcast %cst_26 : f32 to vector<16x256xf32>
    %34 = arith.maximumf %32, %33 : vector<16x256xf32>
    %c0_27 = arith.constant 0 : index
    %c0_28 = arith.constant 0 : index
    %35 = vector.load %arg6[%c0_27, %c0_28] : memref<256x128xf32, #tpu.memory_space<vmem>>, vector<256x128xf32>
    %cst_29 = arith.constant dense<0.000000e+00> : vector<16x128xf32>
    %36 = tpu.matmul %34, %35, %cst_29 {dimension_numbers = #tpu.dot_dimension_numbers<[1], [0], [0], [1], [0, 0, 1, 1], [], []>} : vector<16x256xf32>, vector<256x128xf32>, vector<16x128xf32> -> vector<16x128xf32>
    %c0_30 = arith.constant 0 : index
    %c0_31 = arith.constant 0 : index
    %37 = vector.load %arg7[%c0_30, %c0_31] : memref<1x128xf32, #tpu.memory_space<vmem>>, vector<1x128xf32>
    %38 = vector.broadcast %37 : vector<1x128xf32> to vector<16x128xf32>
    %39 = arith.addf %36, %38 : vector<16x128xf32>
    %c0_32 = arith.constant 0 : index
    %c0_33 = arith.constant 0 : index
    %40 = vector.load %arg8[%c0_32, %c0_33] : memref<16x128xf32, #tpu.memory_space<vmem>>, vector<16x128xf32>
    tpu.vector_store %arg8[%c0_32, %c0_33], %39 {strides = array<i32>} : memref<16x128xf32, #tpu.memory_space<vmem>>, vector<16x128xf32>,
    return
  }
  func.func @transform_0(%arg0: i32) -> (i32, i32) {
    %c0_i32 = arith.constant 0 : i32
    %c0_i32_0 = arith.constant 0 : i32
    return %arg0, %c0_i32 : i32, i32
  }
  func.func @transform_1(%arg0: i32) -> (i32, i32, i32) {
    %c0_i32 = arith.constant 0 : i32
    %c0_i32_0 = arith.constant 0 : i32
    %c0_i32_1 = arith.constant 0 : i32
    %c0_i32_2 = arith.constant 0 : i32
    return %c0_i32, %c0_i32_0, %c0_i32_1 : i32, i32, i32
  }
  func.func @transform_2(%arg0: i32) -> (i32, i32, i32) {
    %c0_i32 = arith.constant 0 : i32
    %c0_i32_0 = arith.constant 0 : i32
    %c0_i32_1 = arith.constant 0 : i32
    %c0_i32_2 = arith.constant 0 : i32
    return %c0_i32, %c0_i32_0, %c0_i32_1 : i32, i32, i32
  }
  func.func @transform_3(%arg0: i32) -> (i32, i32, i32) {
    %c0_i32 = arith.constant 0 : i32
    %c0_i32_0 = arith.constant 0 : i32
    %c0_i32_1 = arith.constant 0 : i32
    %c0_i32_2 = arith.constant 0 : i32
    return %c0_i32, %c0_i32_0, %c0_i32_1 : i32, i32, i32
  }
  func.func @transform_4(%arg0: i32) -> (i32, i32, i32) {
    %c0_i32 = arith.constant 0 : i32
    %c0_i32_0 = arith.constant 0 : i32
    %c0_i32_1 = arith.constant 0 : i32
    %c0_i32_2 = arith.constant 0 : i32
    return %c0_i32, %c0_i32_0, %c0_i32_1 : i32, i32, i32
  }
  func.func @transform_5(%arg0: i32) -> (i32, i32) {
    %c0_i32 = arith.constant 0 : i32
    %c0_i32_0 = arith.constant 0 : i32
    %c0_i32_1 = arith.constant 0 : i32
    return %c0_i32, %c0_i32_0 : i32, i32
  }
  func.func @transform_6(%arg0: i32) -> (i32, i32) {
    %c0_i32 = arith.constant 0 : i32
    %c0_i32_0 = arith.constant 0 : i32
    %c0_i32_1 = arith.constant 0 : i32
    return %c0_i32, %c0_i32_0 : i32, i32
  }
  func.func @transform_7(%arg0: i32) -> (i32, i32) {
    %c0_i32 = arith.constant 0 : i32
    %c0_i32_0 = arith.constant 0 : i32
    return %arg0, %c0_i32 : i32, i32
  }
}

</mosaic_0001>

<bundles_post_ra>
// kernel: tpu_custom_call.1
= control target key start
LH: loop header
LB: loop body
LE: loop exit
PB: predicated region body
PF: predicated region fallthrough
CT: control target
= control target key end

     0   :  { %12 = vsyncpa [#allocation3], 0  ;;  %s922_s0 = inlined_call_operand.hbm [shape: f32[16,256], index: 0, kind: input, shape index: {}]   ;;  %s923_s1 = inlined_call_operand.hbm [shape: f32[2,256,256], index: 1, kind: input, shape index: {}]   ;;  %s924_s2 = inlined_call_operand.hbm [shape: f32[2,1,256], index: 2, kind: input, shape index: {}]   ;;  %s925_s3 = inlined_call_operand.hbm [shape: f32[2,1,256], index: 3, kind: input, shape index: {}]   ;;  %s926_s4 = inlined_call_operand.hbm [shape: f32[2,1,256], index: 4, kind: input, shape index: {}]   ;;  %s927_s5 = inlined_call_operand.hbm [shape: f32[256,128], index: 5, kind: input, shape index: {}]   ;;  %s928_s6 = inlined_call_operand.vmem [shape: f32[1,128], index: 6, kind: input, shape index: {}]   ;;  %s929_s7 = inlined_call_operand.hbm [shape: f32[16,128], index: 7, kind: output, shape index: {}]  }
   0x1   :  { %13 = vsyncpa [#allocation6], 0 }
   0x2   :  { %14 = vsyncpa [#allocation9], 0 }
   0x3   :  { %15 = vsyncpa [#allocation12], 0 }
   0x4   :  { %16 = vsyncpa [#allocation4], 0  ;;  %s34_s26 = sshll.u32 %s923_s1, 4  ;;  %s831_s27 = smov [#allocation5]   ;;  %s35_s26 = int_to_ptr.hbm [resolvable:$true] %s34_s26 }
   0x5   :  { %s36_s28 = sshll.u32 %s831_s27, 4  ;;  %s832_s29 = smov 256   ;;  %s37_s28 = int_to_ptr.vmem [resolvable:$true] %s36_s28 }
   0x6   :  { %s833_s30 = smov 16   ;;  %s60_s10 = sshll.u32 %s925_s3, 4  ;;  %s61_s10 = int_to_ptr.hbm [resolvable:$true] %s60_s10 }
   0x7   :  { %42 = dma.hbm_to_vmem [thread:$0]  %s35_s26, 16384, %s37_s28, [#allocation6], %s832_s29, %s832_s29, %s833_s30  }
   0x8   :  { %s834_s11 = smov [#allocation8]   ;;  %s21_s15 = sshll.u32 %s922_s0, 4  ;;  %s22_s15 = int_to_ptr.hbm [resolvable:$true] %s21_s15 }
   0x9   :  { %s62_s12 = sshll.u32 %s834_s11, 4  ;;  %s835_s1 = smov 32   ;;  %s63_s12 = int_to_ptr.vmem [resolvable:$true] %s62_s12 }
   0xa   :  { %s836_s16 = smov 2   ;;  %s47_s19 = sshll.u32 %s924_s2, 4  ;;  %s48_s19 = int_to_ptr.hbm [resolvable:$true] %s47_s19 }
   0xb   :  { %68 = dma.hbm_to_vmem [thread:$0]  %s61_s10, 64, %s63_s12, [#allocation9], %s835_s1, %s835_s1, %s836_s16  }
   0xc   :  { %s837_s20 = smov [#allocation2]   ;;  %s838_s3 = smov [#allocation7]  }
   0xd   :  { %s23_s21 = sshll.u32 %s837_s20, 4  ;;  %s49_s22 = sshll.u32 %s838_s3, 4  ;;  %s24_s21 = int_to_ptr.vmem [resolvable:$true] %s23_s21  ;;  %s50_s22 = int_to_ptr.vmem [resolvable:$true] %s49_s22 }
   0xe   :  { %29 = dma.hbm_to_vmem [thread:$0]  %s22_s15, 512, %s24_s21, [#allocation3], %s832_s29, %s832_s29, %s833_s30  }
   0xf   :  { %s73_s0 = sshll.u32 %s926_s4, 4  ;;  %s86_s27 = sshll.u32 %s927_s5, 4  ;;  %s74_s0 = int_to_ptr.hbm [resolvable:$true] %s73_s0  ;;  %s87_s27 = int_to_ptr.hbm [resolvable:$true] %s86_s27 }
  0x10   :  { %55 = dma.hbm_to_vmem [thread:$0]  %s48_s19, 64, %s50_s22, [#allocation6], %s835_s1, %s835_s1, %s836_s16  }
  0x11   :  { %s839_s28 = smov [#allocation10]   ;;  %s840_s8 = smov [#allocation11]  }
  0x12   :  { %s75_s2 = sshll.u32 %s839_s28, 4  ;;  %s88_s29 = sshll.u32 %s840_s8, 4  ;;  %s76_s2 = int_to_ptr.vmem [resolvable:$true] %s75_s2  ;;  %s89_s29 = int_to_ptr.vmem [resolvable:$true] %s88_s29 }
  0x13   :  { %81 = dma.hbm_to_vmem [thread:$0]  %s74_s0, 64, %s76_s2, [#allocation9], %s835_s1, %s835_s1, %s836_s16  }
  0x14   :  { %s841_s30 = smov 128   ;;  %s842_s9 = smov 8  }
  0x15   :  { %94 = dma.hbm_to_vmem [thread:$0]  %s87_s27, 4096, %s89_s29, [#allocation12], %s841_s30, %s841_s30, %s842_s9  }
  0x16   :  { %821 = dma.done.wait [#allocation3], 512  }
  0x17   :  { %822 = vsyncadd [#allocation3], 4294966784 }
  0x18   :  { %823 = dma.done.wait [#allocation6], 16448  }
  0x19   :  { %824 = vsyncadd [#allocation6], 4294950848 }
  0x1a   :  { %825 = dma.done.wait [#allocation9], 128  }
  0x1b   :  { %826 = vsyncadd [#allocation9], 4294967168 }
  0x1c   :  { %827 = dma.done.wait [#allocation12], 4096  }
  0x1d   :  { %828 = vsyncadd [#allocation12], 4294963200  ;;  %v156_v0 = vld [vmem:[#allocation5 + $0xf8] sm:$0xff]  ;;  %v154_v1 = vld [vmem:[#allocation5 + $0xe8] sm:$0xff]  ;;  %s843_s10 = smov [#allocation13]   ;;  %s591_s14 = sshll.u32 %s929_s7, 4  ;;  %s592_s14 = int_to_ptr.hbm [resolvable:$true] %s591_s14 }
  0x1e   :  { %v188_v2 = vld [vmem:[#allocation5 + $0x1f8] sm:$0xff]  ;;  %241 = vmatpush.msra.mxu2 %v156_v0  ;;  %v155_v3 = vld [vmem:[#allocation5 + $0xf0] sm:$0xff]  ;;  %v186_v4 = vld [vmem:[#allocation5 + $0x1e8] sm:$0xff]  ;;  %s589_s11 = sshll.u32 %s843_s10, 4  ;;  %s590_s11 = int_to_ptr.vmem [resolvable:$true] %s589_s11 }
  0x1f   :  { %264 = vmatpush.msra.mxu3 %v188_v2  ;;  %195 = vmatpush.msra.mxu0 %v155_v3  ;;  %v152_v5 = vld [vmem:[#allocation5 + $0xd8] sm:$0xff]  ;;  %v153_v6 = vld [vmem:[#allocation5 + $0xe0] sm:$0xff]  ;;  %v187_v7 = vld [vmem:[#allocation5 + $0x1f0] sm:$0xff] }
  0x20   :  { %242 = vmatpush.msra.mxu2 %v154_v1  ;;  %v184_v8 = vld [vmem:[#allocation5 + $0x1d8] sm:$0xff]  ;;  %v151_v9 = vld [vmem:[#allocation5 + $0xd0] sm:$0xff]  ;;  %v185_v10 = vld [vmem:[#allocation5 + $0x1e0] sm:$0xff]  ;;  %218 = vmatpush.msra.mxu1 %v187_v7 }
  0x21   :  { %265 = vmatpush.msra.mxu3 %v186_v4  ;;  %196 = vmatpush.msra.mxu0 %v153_v6  ;;  %v150_v11 = vld [vmem:[#allocation5 + $0xc8] sm:$0xff]  ;;  %v149_v13 = vld [vmem:[#allocation5 + $0xc0] sm:$0xff]  ;;  %v183_v14 = vld [vmem:[#allocation5 + $0x1d0] sm:$0xff] }
  0x22   :  { %v182_v12 = vld [vmem:[#allocation5 + $0x1c8] sm:$0xff]  ;;  %243 = vmatpush.msra.mxu2 %v152_v5  ;;  %219 = vmatpush.msra.mxu1 %v185_v10  ;;  %v148_v15 = vld [vmem:[#allocation5 + $0xb8] sm:$0xff]  ;;  %v147_v17 = vld [vmem:[#allocation5 + $0xb0] sm:$0xff] }
  0x23   :  { %266 = vmatpush.msra.mxu3 %v184_v8  ;;  %197 = vmatpush.msra.mxu0 %v151_v9  ;;  %v180_v16 = vld [vmem:[#allocation5 + $0x1b8] sm:$0xff]  ;;  %v181_v18 = vld [vmem:[#allocation5 + $0x1c0] sm:$0xff]  ;;  %v146_v19 = vld [vmem:[#allocation5 + $0xa8] sm:$0xff] }
  0x24   :  { %244 = vmatpush.msra.mxu2 %v150_v11  ;;  %220 = vmatpush.msra.mxu1 %v183_v14  ;;  %v178_v20 = vld [vmem:[#allocation5 + $0x1a8] sm:$0xff]  ;;  %v145_v21 = vld [vmem:[#allocation5 + $0xa0] sm:$0xff]  ;;  %v179_v22 = vld [vmem:[#allocation5 + $0x1b0] sm:$0xff] }
  0x25   :  { %267 = vmatpush.msra.mxu3 %v182_v12  ;;  %198 = vmatpush.msra.mxu0 %v149_v13  ;;  %v144_v23 = vld [vmem:[#allocation5 + $0x98] sm:$0xff]  ;;  %v143_v25 = vld [vmem:[#allocation5 + $0x90] sm:$0xff]  ;;  %v177_v26 = vld [vmem:[#allocation5 + $0x1a0] sm:$0xff] }
  0x26   :  { %245 = vmatpush.msra.mxu2 %v148_v15  ;;  %221 = vmatpush.msra.mxu1 %v181_v18  ;;  %v176_v24 = vld [vmem:[#allocation5 + $0x198] sm:$0xff]  ;;  %v142_v27 = vld [vmem:[#allocation5 + $0x88] sm:$0xff]  ;;  %v141_v29 = vld [vmem:[#allocation5 + $0x80] sm:$0xff] }
  0x27   :  { %268 = vmatpush.msra.mxu3 %v180_v16  ;;  %199 = vmatpush.msra.mxu0 %v147_v17  ;;  %v174_v28 = vld [vmem:[#allocation5 + $0x188] sm:$0xff]  ;;  %v175_v30 = vld [vmem:[#allocation5 + $0x190] sm:$0xff]  ;;  %v140_v31 = vld [vmem:[#allocation5 + $0x78] sm:$0xff] }
  0x28   :  { %246 = vmatpush.msra.mxu2 %v146_v19  ;;  %222 = vmatpush.msra.mxu1 %v179_v22  ;;  %v172_v32 = vld [vmem:[#allocation5 + $0x178] sm:$0xff]  ;;  %v139_v33 = vld [vmem:[#allocation5 + $0x70] sm:$0xff]  ;;  %v173_v34 = vld [vmem:[#allocation5 + $0x180] sm:$0xff] }
  0x29   :  { %269 = vmatpush.msra.mxu3 %v178_v20  ;;  %200 = vmatpush.msra.mxu0 %v145_v21  ;;  %v138_v35 = vld [vmem:[#allocation5 + $0x68] sm:$0xff]  ;;  %v137_v37 = vld [vmem:[#allocation5 + $0x60] sm:$0xff]  ;;  %v171_v38 = vld [vmem:[#allocation5 + $0x170] sm:$0xff] }
  0x2a   :  { %247 = vmatpush.msra.mxu2 %v144_v23  ;;  %223 = vmatpush.msra.mxu1 %v177_v26  ;;  %v170_v36 = vld [vmem:[#allocation5 + $0x168] sm:$0xff]  ;;  %v136_v39 = vld [vmem:[#allocation5 + $0x58] sm:$0xff]  ;;  %v135_v41 = vld [vmem:[#allocation5 + $0x50] sm:$0xff] }
  0x2b   :  { %270 = vmatpush.msra.mxu3 %v176_v24  ;;  %201 = vmatpush.msra.mxu0 %v143_v25  ;;  %v168_v40 = vld [vmem:[#allocation5 + $0x158] sm:$0xff]  ;;  %v169_v42 = vld [vmem:[#allocation5 + $0x160] sm:$0xff]  ;;  %v134_v43 = vld [vmem:[#allocation5 + $0x48] sm:$0xff] }
  0x2c   :  { %248 = vmatpush.msra.mxu2 %v142_v27  ;;  %224 = vmatpush.msra.mxu1 %v175_v30  ;;  %v166_v44 = vld [vmem:[#allocation5 + $0x148] sm:$0xff]  ;;  %v133_v45 = vld [vmem:[#allocation5 + $0x40] sm:$0xff]  ;;  %v167_v46 = vld [vmem:[#allocation5 + $0x150] sm:$0xff] }
  0x2d   :  { %271 = vmatpush.msra.mxu3 %v174_v28  ;;  %202 = vmatpush.msra.mxu0 %v141_v29  ;;  %v132_v47 = vld [vmem:[#allocation5 + $0x38] sm:$0xff]  ;;  %v131_v49 = vld [vmem:[#allocation5 + $0x30] sm:$0xff]  ;;  %v165_v50 = vld [vmem:[#allocation5 + $0x140] sm:$0xff] }
  0x2e   :  { %249 = vmatpush.msra.mxu2 %v140_v31  ;;  %225 = vmatpush.msra.mxu1 %v173_v34  ;;  %v164_v48 = vld [vmem:[#allocation5 + $0x138] sm:$0xff]  ;;  %v130_v51 = vld [vmem:[#allocation5 + $0x28] sm:$0xff]  ;;  %v129_v53 = vld [vmem:[#allocation5 + $0x20] sm:$0xff] }
  0x2f   :  { %272 = vmatpush.msra.mxu3 %v172_v32  ;;  %203 = vmatpush.msra.mxu0 %v139_v33  ;;  %v162_v52 = vld [vmem:[#allocation5 + $0x128] sm:$0xff]  ;;  %v163_v54 = vld [vmem:[#allocation5 + $0x130] sm:$0xff]  ;;  %v128_v55 = vld [vmem:[#allocation5 + $0x18] sm:$0xff] }
  0x30   :  { %250 = vmatpush.msra.mxu2 %v138_v35  ;;  %226 = vmatpush.msra.mxu1 %v171_v38  ;;  %v160_v56 = vld [vmem:[#allocation5 + $0x118] sm:$0xff]  ;;  %v127_v57 = vld [vmem:[#allocation5 + $0x10] sm:$0xff]  ;;  %v161_v58 = vld [vmem:[#allocation5 + $0x120] sm:$0xff] }
  0x31   :  { %273 = vmatpush.msra.mxu3 %v170_v36  ;;  %204 = vmatpush.msra.mxu0 %v137_v37  ;;  %v126_v59 = vld [vmem:[#allocation5 + $0x8] sm:$0xff]  ;;  %v121_v61 = vld [vmem:[#allocation2] sm:$0xff]  ;;  %v159_v0 = vld [vmem:[#allocation5 + $0x110] sm:$0xff] }
  0x32   :  { %251 = vmatpush.msra.mxu2 %v136_v39  ;;  %227 = vmatpush.msra.mxu1 %v169_v42  ;;  %v158_v60 = vld [vmem:[#allocation5 + $0x108] sm:$0xff]  ;;  %v125_v63 = vld [vmem:[#allocation5] sm:$0xff]  ;;  %v343_v1 = vld [vmem:[#allocation5 + $0x2f8] sm:$0xff] }
  0x33   :  { %274 = vmatpush.msra.mxu3 %v168_v40  ;;  %205 = vmatpush.msra.mxu0 %v135_v41  ;;  %v122_v62 = vld [vmem:[#allocation2 + $0x8] sm:$0xff]  ;;  %v157_v2 = vld [vmem:[#allocation5 + $0x100] sm:$0xff]  ;;  %v342_v3 = vld [vmem:[#allocation5 + $0x2f0] sm:$0xff] }
  0x34   :  { %252 = vmatpush.msra.mxu2 %v134_v43  ;;  %228 = vmatpush.msra.mxu1 %v167_v46  ;;  %v341_v4 = vld [vmem:[#allocation5 + $0x2e8] sm:$0xff]  ;;  %v340_v5 = vld [vmem:[#allocation5 + $0x2e0] sm:$0xff]  ;;  %v374_v6 = vld [vmem:[#allocation5 + $0x3f0] sm:$0xff] }
  0x35   :  { %275 = vmatpush.msra.mxu3 %v166_v44  ;;  %206 = vmatpush.msra.mxu0 %v133_v45  ;;  %v375_v7 = vld [vmem:[#allocation5 + $0x3f8] sm:$0xff]  ;;  %v338_v9 = vld [vmem:[#allocation5 + $0x2d0] sm:$0xff]  ;;  %v372_v10 = vld [vmem:[#allocation5 + $0x3e0] sm:$0xff] }
  0x36   :  { %253 = vmatpush.msra.mxu2 %v132_v47  ;;  %229 = vmatpush.msra.mxu1 %v165_v50  ;;  %v339_v8 = vld [vmem:[#allocation5 + $0x2d8] sm:$0xff]  ;;  %v123_v11 = vld [vmem:[#allocation2 + $0x10] sm:$0xff]  ;;  %v373_v13 = vld [vmem:[#allocation5 + $0x3e8] sm:$0xff] }
  0x37   :  { %276 = vmatpush.msra.mxu3 %v164_v48  ;;  %207 = vmatpush.msra.mxu0 %v131_v49  ;;  %v124_v12 = vld [vmem:[#allocation2 + $0x18] sm:$0xff]  ;;  %v336_v14 = vld [vmem:[#allocation5 + $0x2c0] sm:$0xff]  ;;  %v370_v15 = vld [vmem:[#allocation5 + $0x3d0] sm:$0xff] }
  0x38   :  { %254 = vmatpush.msra.mxu2 %v130_v51  ;;  %230 = vmatpush.msra.mxu1 %v163_v54  ;;  %v337_v16 = vld [vmem:[#allocation5 + $0x2c8] sm:$0xff]  ;;  %v371_v17 = vld [vmem:[#allocation5 + $0x3d8] sm:$0xff]  ;;  %v334_v18 = vld [vmem:[#allocation5 + $0x2b0] sm:$0xff] }
  0x39   :  { %277 = vmatpush.msra.mxu3 %v162_v52  ;;  %208 = vmatpush.msra.mxu0 %v129_v53  ;;  %v368_v19 = vld [vmem:[#allocation5 + $0x3c0] sm:$0xff]  ;;  %v335_v20 = vld [vmem:[#allocation5 + $0x2b8] sm:$0xff]  ;;  %v369_v21 = vld [vmem:[#allocation5 + $0x3c8] sm:$0xff] }
  0x3a   :  { %255 = vmatpush.msra.mxu2 %v128_v55  ;;  %231 = vmatpush.msra.mxu1 %v161_v58  ;;  %v332_v22 = vld [vmem:[#allocation5 + $0x2a0] sm:$0xff]  ;;  %v366_v23 = vld [vmem:[#allocation5 + $0x3b0] sm:$0xff]  ;;  %v333_v24 = vld [vmem:[#allocation5 + $0x2a8] sm:$0xff] }
  0x3b   :  { %278 = vmatpush.msra.mxu3 %v160_v56  ;;  %209 = vmatpush.msra.mxu0 %v127_v57  ;;  %v367_v25 = vld [vmem:[#allocation5 + $0x3b8] sm:$0xff]  ;;  %v330_v26 = vld [vmem:[#allocation5 + $0x290] sm:$0xff]  ;;  %v364_v27 = vld [vmem:[#allocation5 + $0x3a0] sm:$0xff] }
  0x3c   :  { %256 = vmatpush.msra.mxu2 %v126_v59  ;;  %232 = vmatpush.msra.mxu1 %v159_v0  ;;  %v331_v28 = vld [vmem:[#allocation5 + $0x298] sm:$0xff]  ;;  %v365_v29 = vld [vmem:[#allocation5 + $0x3a8] sm:$0xff]  ;;  %v328_v30 = vld [vmem:[#allocation5 + $0x280] sm:$0xff] }
  0x3d   :  { %279 = vmatpush.msra.mxu3 %v158_v60  ;;  %257 = vmatmul.f32.vlgmr.msra.gmra.mxu2 %v121_v61  ;;  %v362_v31 = vld [vmem:[#allocation5 + $0x390] sm:$0xff]  ;;  %v329_v32 = vld [vmem:[#allocation5 + $0x288] sm:$0xff]  ;;  %v363_v33 = vld [vmem:[#allocation5 + $0x398] sm:$0xff] }
  0x3e   :  { %280 = vmatmul.f32.vlgmr.msra.gmra.mxu3 %v122_v62  ;;  %210 = vmatpush.msra.mxu0 %v125_v63  ;;  %v326_v34 = vld [vmem:[#allocation5 + $0x270] sm:$0xff]  ;;  %v360_v35 = vld [vmem:[#allocation5 + $0x380] sm:$0xff]  ;;  %v327_v36 = vld [vmem:[#allocation5 + $0x278] sm:$0xff] }
  0x3f   :  { %211 = vmatmul.f32.vlgmr.msra.gmra.mxu0 %v121_v61  ;;  %429 = vmatpush.msrb.mxu2 %v343_v1  ;;  %v361_v37 = vld [vmem:[#allocation5 + $0x388] sm:$0xff]  ;;  %v324_v38 = vld [vmem:[#allocation5 + $0x260] sm:$0xff]  ;;  %v358_v39 = vld [vmem:[#allocation5 + $0x370] sm:$0xff] }
  0x40   :  { %233 = vmatpush.msra.mxu1 %v157_v2  ;;  %383 = vmatpush.msrb.mxu0 %v342_v3  ;;  %v325_v40 = vld [vmem:[#allocation5 + $0x268] sm:$0xff]  ;;  %v359_v41 = vld [vmem:[#allocation5 + $0x378] sm:$0xff]  ;;  %v322_v42 = vld [vmem:[#allocation5 + $0x250] sm:$0xff] }
  0x41   :  { %234 = vmatmul.f32.vlgmr.msra.gmra.mxu1 %v122_v62  ;;  %430 = vmatpush.msrb.mxu2 %v341_v4  ;;  %v356_v43 = vld [vmem:[#allocation5 + $0x360] sm:$0xff]  ;;  %v323_v44 = vld [vmem:[#allocation5 + $0x258] sm:$0xff]  ;;  %v357_v45 = vld [vmem:[#allocation5 + $0x368] sm:$0xff] }
  0x42   :  { %384 = vmatpush.msrb.mxu0 %v340_v5  ;;  %406 = vmatpush.msrb.mxu1 %v374_v6  ;;  %v320_v46 = vld [vmem:[#allocation5 + $0x240] sm:$0xff]  ;;  %v354_v47 = vld [vmem:[#allocation5 + $0x350] sm:$0xff]  ;;  %v321_v48 = vld [vmem:[#allocation5 + $0x248] sm:$0xff] }
  0x43   :  { %452 = vmatpush.msrb.mxu3 %v375_v7  ;;  %431 = vmatpush.msrb.mxu2 %v339_v8  ;;  %v355_v49 = vld [vmem:[#allocation5 + $0x358] sm:$0xff]  ;;  %v318_v50 = vld [vmem:[#allocation5 + $0x230] sm:$0xff]  ;;  %v352_v51 = vld [vmem:[#allocation5 + $0x340] sm:$0xff] }
  0x44   :  { %385 = vmatpush.msrb.mxu0 %v338_v9  ;;  %407 = vmatpush.msrb.mxu1 %v372_v10  ;;  %v319_v52 = vld [vmem:[#allocation5 + $0x238] sm:$0xff]  ;;  %v353_v53 = vld [vmem:[#allocation5 + $0x348] sm:$0xff]  ;;  %v316_v54 = vld [vmem:[#allocation5 + $0x220] sm:$0xff] }
  0x45   :  { %260 = vmatmul.f32.gmra.mxu2 %v123_v11  ;;  %453 = vmatpush.msrb.mxu3 %v373_v13  ;;  %v350_v55 = vld [vmem:[#allocation5 + $0x330] sm:$0xff]  ;;  %v317_v56 = vld [vmem:[#allocation5 + $0x228] sm:$0xff]  ;;  %v351_v57 = vld [vmem:[#allocation5 + $0x338] sm:$0xff] }
  0x46   :  { %283 = vmatmul.f32.gmra.mxu3 %v124_v12  ;;  %386 = vmatpush.msrb.mxu0 %v336_v14  ;;  %v314_v58 = vld [vmem:[#allocation5 + $0x210] sm:$0xff]  ;;  %v348_v59 = vld [vmem:[#allocation5 + $0x320] sm:$0xff]  ;;  %v315_v60 = vld [vmem:[#allocation5 + $0x218] sm:$0xff] }
  0x47   :  { %214 = vmatmul.f32.gmra.mxu0 %v123_v11  ;;  %408 = vmatpush.msrb.mxu1 %v370_v15  ;;  %v349_v61 = vld [vmem:[#allocation5 + $0x328] sm:$0xff]  ;;  %v312_v62 = vld [vmem:[#allocation5 + $0x200] sm:$0xff]  ;;  %v346_v63 = vld [vmem:[#allocation5 + $0x310] sm:$0xff] }
  0x48   :  { %432 = vmatpush.msrb.mxu2 %v337_v16  ;;  %454 = vmatpush.msrb.mxu3 %v371_v17  ;;  %v313_v0 = vld [vmem:[#allocation5 + $0x208] sm:$0xff]  ;;  %v347_v1 = vld [vmem:[#allocation5 + $0x318] sm:$0xff]  ;;  %v344_v2 = vld [vmem:[#allocation5 + $0x300] sm:$0xff] }
  0x49   :  { %237 = vmatmul.f32.gmra.mxu1 %v124_v12  ;;  %387 = vmatpush.msrb.mxu0 %v334_v18  ;;  %v345_v3 = vld [vmem:[#allocation5 + $0x308] sm:$0xff]  ;;  %v515_v5 = vld [vmem:[#allocation11 + $0x70] sm:$0xff]  ;;  %v514_v7 = vld [vmem:[#allocation11 + $0x68] sm:$0xff] }
  0x4a   :  { %409 = vmatpush.msrb.mxu1 %v368_v19  ;;  %433 = vmatpush.msrb.mxu2 %v335_v20  ;;  %v516_v4 = vld [vmem:[#allocation11 + $0x78] sm:$0xff]  ;;  %v531_v8 = vld [vmem:[#allocation11 + $0xf0] sm:$0xff]  ;;  %v530_v10 = vld [vmem:[#allocation11 + $0xe8] sm:$0xff] }
  0x4b   :  { %455 = vmatpush.msrb.mxu3 %v369_v21  ;;  %388 = vmatpush.msrb.mxu0 %v332_v22  ;;  %v532_v6 = vld [vmem:[#allocation11 + $0xf8] sm:$0xff]  ;;  %v905_v9 = vld [vmem:[#allocation7] sm:$0x3]  ;;  %v513_v11 = vld [vmem:[#allocation11 + $0x60] sm:$0xff] }
  0x4c   :  { %410 = vmatpush.msrb.mxu1 %v366_v23  ;;  %434 = vmatpush.msrb.mxu2 %v333_v24  ;;  %v529_v12 = vld [vmem:[#allocation11 + $0xe0] sm:$0xff]  ;;  %v191_v13 = vperm.slane %v905_v9, 0  ;;  %v512_v14 = vld [vmem:[#allocation11 + $0x58] sm:$0xff]  ;;  %v511_v17 = vld [vmem:[#allocation11 + $0x50] sm:$0xff]  ;;  %v192_v23 = vperm.slane %v905_v9, 1 }
  0x4d   :  { %456 = vmatpush.msrb.mxu3 %v367_v25  ;;  %389 = vmatpush.msrb.mxu0 %v330_v26  ;;  %v908_v15 = vld [vmem:[#allocation8] sm:$0x3]  ;;  %v297_v19 = vld [vmem:[#allocation10] sm:$0x3]  ;;  %v527_v20 = vld [vmem:[#allocation11 + $0xd0] sm:$0xff] }
  0x4e   :  { %411 = vmatpush.msrb.mxu1 %v364_v27  ;;  %435 = vmatpush.msrb.mxu2 %v331_v28  ;;  %v528_v16 = vld [vmem:[#allocation11 + $0xd8] sm:$0xff]  ;;  %v289_v22 = vperm.slane %v908_v15, 0  ;;  %v510_v24 = vld [vmem:[#allocation11 + $0x48] sm:$0xff]  ;;  %v299_v28 = vperm.slane %v297_v19, 0  ;;  %v377_v9 = vld [vmem:[#allocation7 + $0x2] sm:$0x3] }
  0x4f   :  { %457 = vmatpush.msrb.mxu3 %v365_v29  ;;  %390 = vmatpush.msrb.mxu0 %v328_v30  ;;  %v526_v26 = vld [vmem:[#allocation11 + $0xc8] sm:$0xff]  ;;  %v509_v29 = vld [vmem:[#allocation11 + $0x40] sm:$0xff] }
  0x50   :  { %412 = vmatpush.msrb.mxu1 %v362_v31  ;;  %436 = vmatpush.msrb.mxu2 %v329_v32 }
  0x51   :  { %458 = vmatpush.msrb.mxu3 %v363_v33  ;;  %391 = vmatpush.msrb.mxu0 %v326_v34  ;;  %v290_v34 = vperm.slane %v908_v15, 1 }
  0x52   :  { %413 = vmatpush.msrb.mxu1 %v360_v35  ;;  %437 = vmatpush.msrb.mxu2 %v327_v36  ;;  %v508_v35 = vld [vmem:[#allocation11 + $0x38] sm:$0xff] }
  0x53   :  { %459 = vmatpush.msrb.mxu3 %v361_v37  ;;  %392 = vmatpush.msrb.mxu0 %v324_v38  ;;  %v300_v38 = vperm.slane %v297_v19, 1 }
  0x54   :  { %414 = vmatpush.msrb.mxu1 %v358_v39  ;;  %438 = vmatpush.msrb.mxu2 %v325_v40  ;;  %v507_v39 = vld [vmem:[#allocation11 + $0x30] sm:$0xff] }
  0x55   :  { %460 = vmatpush.msrb.mxu3 %v359_v41  ;;  %393 = vmatpush.msrb.mxu0 %v322_v42 }
  0x56   :  { %415 = vmatpush.msrb.mxu1 %v356_v43  ;;  %439 = vmatpush.msrb.mxu2 %v323_v44 }
  0x57   :  { %461 = vmatpush.msrb.mxu3 %v357_v45  ;;  %394 = vmatpush.msrb.mxu0 %v320_v46 }
  0x58   :  { %416 = vmatpush.msrb.mxu1 %v354_v47  ;;  %440 = vmatpush.msrb.mxu2 %v321_v48 }
  0x59   :  { %462 = vmatpush.msrb.mxu3 %v355_v49  ;;  %395 = vmatpush.msrb.mxu0 %v318_v50 }
  0x5a   :  { %417 = vmatpush.msrb.mxu1 %v352_v51  ;;  %441 = vmatpush.msrb.mxu2 %v319_v52 }
  0x5b   :  { %463 = vmatpush.msrb.mxu3 %v353_v53  ;;  %396 = vmatpush.msrb.mxu0 %v316_v54 }
  0x5c   :  { %418 = vmatpush.msrb.mxu1 %v350_v55  ;;  %442 = vmatpush.msrb.mxu2 %v317_v56 }
  0x5d   :  { %464 = vmatpush.msrb.mxu3 %v351_v57  ;;  %397 = vmatpush.msrb.mxu0 %v314_v58  ;;  %v506_v58 = vld [vmem:[#allocation11 + $0x28] sm:$0xff] }
  0x5e   :  { %419 = vmatpush.msrb.mxu1 %v348_v59  ;;  %443 = vmatpush.msrb.mxu2 %v315_v60  ;;  %v525_v59 = vld [vmem:[#allocation11 + $0xc0] sm:$0xff] }
  0x5f   :  { %465 = vmatpush.msrb.mxu3 %v349_v61  ;;  %398 = vmatpush.msrb.mxu0 %v312_v62  ;;  %v505_v60 = vld [vmem:[#allocation11 + $0x20] sm:$0xff]  ;;  %v524_v61 = vld [vmem:[#allocation11 + $0xb8] sm:$0xff] }
  0x60   :  { %420 = vmatpush.msrb.mxu1 %v346_v63  ;;  %444 = vmatpush.msrb.mxu2 %v313_v0  ;;  %v504_v62 = vld [vmem:[#allocation11 + $0x18] sm:$0xff]  ;;  %v523_v63 = vld [vmem:[#allocation11 + $0xb0] sm:$0xff] }
  0x61   :  { %466 = vmatpush.msrb.mxu3 %v347_v1  ;;  %537 = vmatpush.msra.mxu0 %v516_v4  ;;  %v503_v0 = vld [vmem:[#allocation11 + $0x10] sm:$0xff]  ;;  %v522_v1 = vld [vmem:[#allocation11 + $0xa8] sm:$0xff] }
  0x62   :  { %421 = vmatpush.msrb.mxu1 %v344_v2  ;;  %607 = vmatpush.msra.mxu2 %v516_v4  ;;  %v502_v2 = vld [vmem:[#allocation11 + $0x8] sm:$0xff]  ;;  %v501_v4 = vld [vmem:[#allocation11] sm:$0xff] }
  0x63   :  { %467 = vmatpush.msrb.mxu3 %v345_v3  ;;  %538 = vmatpush.msra.mxu0 %v515_v5  ;;  %v521_v3 = vld [vmem:[#allocation11 + $0xa0] sm:$0xff] }
  0x64   :  { %560 = vmatpush.msra.mxu1 %v532_v6  ;;  %608 = vmatpush.msra.mxu2 %v515_v5  ;;  %v520_v5 = vld [vmem:[#allocation11 + $0x98] sm:$0xff] }
  0x65   :  { %623 = vmatpush.msra.mxu3 %v532_v6  ;;  %539 = vmatpush.msra.mxu0 %v514_v7  ;;  %v519_v6 = vld [vmem:[#allocation11 + $0x90] sm:$0xff] }
  0x66   :  { %561 = vmatpush.msra.mxu1 %v531_v8  ;;  %609 = vmatpush.msra.mxu2 %v514_v7  ;;  %v518_v7 = vld [vmem:[#allocation11 + $0x88] sm:$0xff] }
  0x67   :  { %624 = vmatpush.msra.mxu3 %v531_v8  ;;  %540 = vmatpush.msra.mxu0 %v513_v11  ;;  %v517_v8 = vld [vmem:[#allocation11 + $0x80] sm:$0xff] }
  0x68   :  { %562 = vmatpush.msra.mxu1 %v530_v10  ;;  %610 = vmatpush.msra.mxu2 %v513_v11 }
  0x69   :  { %625 = vmatpush.msra.mxu3 %v530_v10  ;;  %541 = vmatpush.msra.mxu0 %v512_v14  ;;  %v379_v10 = vperm.slane %v377_v9, 0 }
  0x6a   :  { %563 = vmatpush.msra.mxu1 %v529_v12  ;;  %611 = vmatpush.msra.mxu2 %v512_v14  ;;  %v487_v14 = vld [vmem:[#allocation10 + $0x2] sm:$0x3] }
  0x6b   :  { %626 = vmatpush.msra.mxu3 %v529_v12  ;;  %542 = vmatpush.msra.mxu0 %v511_v17  ;;  %v476_v12 = vld [vmem:[#allocation8 + $0x2] sm:$0x3]  ;;  %v489_v19 = vperm.slane %v487_v14, 0 }
  0x6c   :  { %564 = vmatpush.msra.mxu1 %v528_v16  ;;  %612 = vmatpush.msra.mxu2 %v511_v17  ;;  %v478_v15 = vperm.slane %v476_v12, 0 }
  0x6d   :  { %627 = vmatpush.msra.mxu3 %v528_v16  ;;  %543 = vmatpush.msra.mxu0 %v510_v24  ;;  %v380_v16 = vperm.slane %v377_v9, 1 }
  0x6e   :  { %565 = vmatpush.msra.mxu1 %v527_v20  ;;  %613 = vmatpush.msra.mxu2 %v510_v24 }
  0x6f   :  { %628 = vmatpush.msra.mxu3 %v527_v20  ;;  %544 = vmatpush.msra.mxu0 %v509_v29 }
  0x70   :  { %566 = vmatpush.msra.mxu1 %v526_v26  ;;  %614 = vmatpush.msra.mxu2 %v509_v29 }
  0x71   :  { %629 = vmatpush.msra.mxu3 %v526_v26  ;;  %545 = vmatpush.msra.mxu0 %v508_v35  ;;  %v479_v26 = vperm.slane %v476_v12, 1 }
  0x72   :  { %615 = vmatpush.msra.mxu2 %v508_v35  ;;  %567 = vmatpush.msra.mxu1 %v525_v59 }
  0x73   :  { %546 = vmatpush.msra.mxu0 %v507_v39  ;;  %630 = vmatpush.msra.mxu3 %v525_v59 }
  0x74   :  { %616 = vmatpush.msra.mxu2 %v507_v39  ;;  %568 = vmatpush.msra.mxu1 %v524_v61 }
  0x75   :  { %547 = vmatpush.msra.mxu0 %v506_v58  ;;  %631 = vmatpush.msra.mxu3 %v524_v61 }
  0x76   :  { %617 = vmatpush.msra.mxu2 %v506_v58  ;;  %569 = vmatpush.msra.mxu1 %v523_v63 }
  0x77   :  { %548 = vmatpush.msra.mxu0 %v505_v60  ;;  %632 = vmatpush.msra.mxu3 %v523_v63 }
  0x78   :  { %618 = vmatpush.msra.mxu2 %v505_v60  ;;  %570 = vmatpush.msra.mxu1 %v522_v1 }
  0x79   :  { %549 = vmatpush.msra.mxu0 %v504_v62  ;;  %633 = vmatpush.msra.mxu3 %v522_v1 }
  0x7a   :  { %619 = vmatpush.msra.mxu2 %v504_v62  ;;  %571 = vmatpush.msra.mxu1 %v521_v3 }
  0x7b   :  { %550 = vmatpush.msra.mxu0 %v503_v0  ;;  %634 = vmatpush.msra.mxu3 %v521_v3 }
  0x7c   :  { %620 = vmatpush.msra.mxu2 %v503_v0  ;;  %572 = vmatpush.msra.mxu1 %v520_v5 }
  0x7d   :  { %551 = vmatpush.msra.mxu0 %v502_v2  ;;  %635 = vmatpush.msra.mxu3 %v520_v5 }
  0x7e   :  { %621 = vmatpush.msra.mxu2 %v502_v2  ;;  %573 = vmatpush.msra.mxu1 %v519_v6 }
  0x7f   :  { %552 = vmatpush.msra.mxu0 %v501_v4  ;;  %636 = vmatpush.msra.mxu3 %v519_v6 }
  0x80   :  { %622 = vmatpush.msra.mxu2 %v501_v4  ;;  %574 = vmatpush.msra.mxu1 %v518_v7 }
  0x81   :  { %637 = vmatpush.msra.mxu3 %v518_v7 }
  0x82   :  { %575 = vmatpush.msra.mxu1 %v517_v8 }
  0x83   :  { %638 = vmatpush.msra.mxu3 %v517_v8 }
  0xbc   :  { %v212_v18 = vpop.f32.mrf.mxu0 }
  0xbd   :  { %v213_v21 = vadd.f32 %v212_v18, %v191_v13 }
  0xbe   :  { %v235_v25 = vpop.f32.mrf.mxu1 }
  0xbf   :  { %v236_v27 = vadd.f32 %v235_v25, %v213_v21 }
  0xc0   :  { %v258_v30 = vpop.f32.mrf.mxu2 }
  0xc1   :  { %v281_v31 = vpop.f32.mrf.mxu3  ;;  %v293_v32 = vmul.f32 %v289_v22, %v236_v27  ;;  %v259_v33 = vadd.f32 %v258_v30, %v192_v23  ;;  %v490_v30 = vperm.slane %v487_v14, 1 }
  0xc3   :  { %v282_v36 = vadd.f32 %v281_v31, %v259_v33  ;;  %v303_v37 = vadd.f32 %v299_v28, %v293_v32 }
  0xc4   :  { %v215_v40 = vpop.f32.mrf.mxu0 }
  0xc5   :  { %v294_v41 = vmul.f32 %v290_v34, %v282_v36  ;;  %v216_v42 = vadd.f32 %v215_v40, %v191_v13  ;;  %v307_v43 = vmax.f32 %v303_v37, 0.0 }
  0xc6   :  { %v238_v44 = vpop.f32.mrf.mxu1 }
  0xc7   :  { %v239_v45 = vadd.f32 %v238_v44, %v216_v42  ;;  %399 = vmatmul.f32.vlgmr.msrb.gmra.mxu0 %v307_v43  ;;  %445 = vmatmul.f32.vlgmr.msrb.gmra.mxu2 %v307_v43  ;;  %v304_v46 = vadd.f32 %v300_v38, %v294_v41 }
  0xc8   :  { %v261_v47 = vpop.f32.mrf.mxu2 }
  0xc9   :  { %v284_v48 = vpop.f32.mrf.mxu3  ;;  %v295_v49 = vmul.f32 %v289_v22, %v239_v45  ;;  %v262_v50 = vadd.f32 %v261_v47, %v192_v23  ;;  %v308_v51 = vmax.f32 %v304_v46, 0.0  ;;  %v652_v46 = vld [vmem:[%s928_s6] ss:$0 sm:$0xff] }
  0xcb   :  { %v285_v52 = vadd.f32 %v284_v48, %v262_v50  ;;  %422 = vmatmul.f32.vlgmr.msrb.gmra.mxu1 %v308_v51  ;;  %468 = vmatmul.f32.vlgmr.msrb.gmra.mxu3 %v308_v51  ;;  %v305_v53 = vadd.f32 %v299_v28, %v295_v49 }
  0xcd   :  { %v296_v54 = vmul.f32 %v290_v34, %v285_v52  ;;  %v309_v55 = vmax.f32 %v305_v53, 0.0 }
  0xcf   :  { %402 = vmatmul.f32.gmra.mxu0 %v309_v55  ;;  %448 = vmatmul.f32.gmra.mxu2 %v309_v55  ;;  %v306_v56 = vadd.f32 %v300_v38, %v296_v54 }
  0xd1   :  { %v310_v57 = vmax.f32 %v306_v56, 0.0 }
  0xd3   :  { %425 = vmatmul.f32.gmra.mxu1 %v310_v57  ;;  %471 = vmatmul.f32.gmra.mxu3 %v310_v57 }
 0x144   :  { %v400_v11 = vpop.f32.mrf.mxu0 }
 0x145   :  { %v401_v13 = vadd.f32 %v400_v11, %v379_v10 }
 0x148   :  { %v423_v17 = vpop.f32.mrf.mxu1 }
 0x149   :  { %v424_v18 = vadd.f32 %v423_v17, %v401_v13 }
 0x14a   :  { %v446_v20 = vpop.f32.mrf.mxu2 }
 0x14b   :  { %v482_v21 = vmul.f32 %v478_v15, %v424_v18  ;;  %v447_v22 = vadd.f32 %v446_v20, %v380_v16 }
 0x14c   :  { %v403_v23 = vpop.f32.mrf.mxu0 }
 0x14d   :  { %v493_v24 = vadd.f32 %v489_v19, %v482_v21  ;;  %v404_v25 = vadd.f32 %v403_v23, %v379_v10 }
 0x14e   :  { %v469_v27 = vpop.f32.mrf.mxu3 }
 0x14f   :  { %v497_v28 = vmax.f32 %v493_v24, 0.0  ;;  %v470_v29 = vadd.f32 %v469_v27, %v447_v22 }
 0x150   :  { %v426_v31 = vpop.f32.mrf.mxu1 }
 0x151   :  { %v483_v32 = vmul.f32 %v479_v26, %v470_v29  ;;  %v427_v33 = vadd.f32 %v426_v31, %v404_v25  ;;  %553 = vmatmul.f32.vlgmr.msra.gmra.mxu0 %v497_v28 }
 0x152   :  { %v449_v34 = vpop.f32.mrf.mxu2 }
 0x153   :  { %v494_v35 = vadd.f32 %v490_v30, %v483_v32  ;;  %v484_v36 = vmul.f32 %v478_v15, %v427_v33  ;;  %v450_v37 = vadd.f32 %v449_v34, %v380_v16 }
 0x155   :  { %v498_v38 = vmax.f32 %v494_v35, 0.0  ;;  %v495_v39 = vadd.f32 %v489_v19, %v484_v36 }
 0x156   :  { %v472_v40 = vpop.f32.mrf.mxu3 }
 0x157   :  { %v499_v41 = vmax.f32 %v495_v39, 0.0  ;;  %v473_v42 = vadd.f32 %v472_v40, %v450_v37  ;;  %576 = vmatmul.f32.vlgmr.msra.gmra.mxu1 %v498_v38 }
 0x159   :  { %v485_v43 = vmul.f32 %v479_v26, %v473_v42  ;;  %556 = vmatmul.f32.vlgmr.msra.gmra.mxu2 %v499_v41 }
 0x15b   :  { %v496_v44 = vadd.f32 %v490_v30, %v485_v43 }
 0x15d   :  { %v500_v45 = vmax.f32 %v496_v44, 0.0 }
 0x15f   :  { %579 = vmatmul.f32.vlgmr.msra.gmra.mxu3 %v500_v45 }
 0x1ce   :  { %v554_v47 = vpop.f32.mrf.mxu0 }
 0x1cf   :  { %v555_v48 = vadd.f32 %v652_v46, %v554_v47 }
 0x1d4   :  { %v577_v49 = vpop.f32.mrf.mxu1 }
 0x1d5   :  { %v578_v50 = vadd.f32 %v577_v49, %v555_v48 }
 0x1d7   :  { %583 = vst [vmem:[#allocation13] sm:$0xff] %v578_v50 }
 0x1dc   :  { %v557_v51 = vpop.f32.mrf.mxu2 }
 0x1dd   :  { %v558_v52 = vadd.f32 %v652_v46, %v557_v51 }
 0x1e2   :  { %v580_v53 = vpop.f32.mrf.mxu3 }
 0x1e3   :  { %v581_v54 = vadd.f32 %v580_v53, %v558_v52 }
 0x1e5   :  { %584 = vst [vmem:[#allocation13 + $0x8] sm:$0xff] %v581_v54 }
 0x1e6   :  { %597 = dma.vmem_to_hbm [thread:$0]  %s590_s11, 256, %s592_s14, [#allocation4], %s841_s30, %s841_s30, %s842_s9  }
 0x1e7   :  { %829 = dma.done.wait [#allocation4], 256  }
 0x1e8   :  { %830 = vsyncadd [#allocation4], 4294967040 }
 0x1e9   :  { %602 = vsyncpa [#allocation3], 1 }
 0x1ea   :  { %603 = vsyncpa [#allocation6], 1 }
 0x1eb   :  { %604 = vsyncpa [#allocation9], 1 }
 0x1ec   :  { %605 = vsyncpa [#allocation12], 1 }
 0x1ed   :  { %606 = vsyncpa [#allocation4], 1 }

</bundles_post_ra>
